<compile_context>
chip_gen: v7x
topology: tpu7x:2x2x1
jax: 0.10.0
libtpu: 0.0.40
codegen_flags: <defaults>
</compile_context>

<pallas_src>
import jax
import jax.numpy as jnp
from jax.experimental import pallas as pl
from jax.experimental.pallas import tpu as pltpu

IN_DIM = 3 * 3 * 2   # 18
HID = 128
OUT_DIM = 9


def dqn_kernel(x_ref, w1_ref, b1_ref, w2_ref, b2_ref,
               w3_ref, b3_ref, w4_ref, b4_ref, o_ref):
    # Matmuls in bf16 (MXU-native on all generations), accumulate in f32;
    # bias add + ReLU in f32 (VPU-safe on v5e), recast to bf16 between layers.
    x = x_ref[...]
    if x.dtype != jnp.bfloat16:
        x = x.astype(jnp.bfloat16)

    h = jnp.dot(x, w1_ref[...], preferred_element_type=jnp.float32) + b1_ref[...]
    h = jnp.maximum(h, 0.0).astype(jnp.bfloat16)

    h = jnp.dot(h, w2_ref[...], preferred_element_type=jnp.float32) + b2_ref[...]
    h = jnp.maximum(h, 0.0).astype(jnp.bfloat16)

    h = jnp.dot(h, w3_ref[...], preferred_element_type=jnp.float32) + b3_ref[...]
    h = jnp.maximum(h, 0.0).astype(jnp.bfloat16)

    out = jnp.dot(h, w4_ref[...], preferred_element_type=jnp.float32) + b4_ref[...]
    o_ref[...] = out.astype(o_ref.dtype)


def _round_up(n, m):
    return pl.cdiv(n, m) * m


def prepare_params(params):
    """One-time (at init / after each optimizer step) prep: bf16 weights for the MXU,
    f32 biases added into the f32 accumulator. Keeps per-call wrapper free of cast ops."""
    prepared = {}
    for i in range(1, 5):
        prepared[f"w{i}"] = params[f"w{i}"].astype(jnp.bfloat16)
        prepared[f"b{i}"] = params[f"b{i}"].astype(jnp.float32)
    return prepared


def dqn_forward(x, params, tile_b=2048):
    """x: (B, 18) float32 or bfloat16. params: prepared dict (see prepare_params).
    Returns (B, 9) float32."""
    B, F = x.shape
    assert F == IN_DIM

    # Guard (zero-cost if params already prepared).
    def _w(i):
        p = params[f"w{i}"]
        return p if p.dtype == jnp.bfloat16 else p.astype(jnp.bfloat16)

    def _b(i):
        p = params[f"b{i}"]
        return p if p.dtype == jnp.float32 else p.astype(jnp.float32)

    w1, w2, w3, w4 = _w(1), _w(2), _w(3), _w(4)
    b1, b2, b3, b4 = _b(1), _b(2), _b(3), _b(4)

    # Batch tile: multiple of 8 sublanes; big for large B (amortize ~0.35us/step grid
    # overhead), shrunk for tiny B. No padding of x: Pallas masks the ragged last block.
    tb = min(tile_b, _round_up(B, 8))
    steps = pl.cdiv(B, tb)
    if steps > 1 and steps % 2 == 1:
        # Keep an even (>=2) number of grid steps so both v7x TensorCores get work.
        tb = _round_up(pl.cdiv(B, steps + 1), 8)
        steps = pl.cdiv(B, tb)
    grid = (steps,)

    # Resident operands: full-array blocks with constant index maps (stay in VMEM
    # across all grid steps); only x / out tiles stream.
    def resident(arr):
        return pl.BlockSpec(arr.shape, lambda i, _nd=arr.ndim: (0,) * _nd)

    flops = 2 * B * (IN_DIM * HID + HID * HID + HID * HID + HID * OUT_DIM)
    weight_bytes = (w1.size + w2.size + w3.size + w4.size) * 2 \
                 + (b1.size + b2.size + b3.size + b4.size) * 4
    bytes_accessed = B * (IN_DIM * x.dtype.itemsize + OUT_DIM * 4) + weight_bytes

    out = pl.pallas_call(
        dqn_kernel,
        out_shape=jax.ShapeDtypeStruct((B, OUT_DIM), jnp.float32),
        grid=grid,
        in_specs=[
            pl.BlockSpec((tb, IN_DIM), lambda i: (i, 0)),   # streamed per batch tile
            resident(w1), resident(b1),
            resident(w2), resident(b2),
            resident(w3), resident(b3),
            resident(w4), resident(b4),
        ],
        out_specs=pl.BlockSpec((tb, OUT_DIM), lambda i: (i, 0)),
        compiler_params=pltpu.CompilerParams(
            dimension_semantics=("parallel",)),   # shards batch tiles across TCs on v7x
        cost_estimate=pl.CostEstimate(
            flops=flops, transcendentals=0, bytes_accessed=bytes_accessed),
    )(x, w1, b1, w2, b2, w3, b3, w4, b4)

    return out


def init_params(key):
    """Mirror PyTorch nn.Linear default init (U[-1/sqrt(fan_in), 1/sqrt(fan_in)]).
    Weights stored transposed relative to PyTorch ((in, out)) so the kernel does x @ W."""
    dims = [(IN_DIM, HID), (HID, HID), (HID, HID), (HID, OUT_DIM)]
    params = {}
    for i, (fan_in, fan_out) in enumerate(dims, start=1):
        key, kw, kb = jax.random.split(key, 3)
        bound = 1.0 / jnp.sqrt(jnp.float32(fan_in))
        params[f"w{i}"] = jax.random.uniform(
            kw, (fan_in, fan_out), jnp.float32, minval=-bound, maxval=bound)
        # biases kept 2D (1, out) for TPU-friendly broadcasting in-kernel
        params[f"b{i}"] = jax.random.uniform(
            kb, (1, fan_out), jnp.float32, minval=-bound, maxval=bound)
    return params


def dqn_reference(x, params):
    """f32 reference (PyTorch Linear semantics)."""
    h = x
    h = jnp.maximum(h @ params["w1"] + params["b1"], 0.0)
    h = jnp.maximum(h @ params["w2"] + params["b2"], 0.0)
    h = jnp.maximum(h @ params["w3"] + params["b3"], 0.0)
    return h @ params["w4"] + params["b4"]


if __name__ == "__main__":
    key = jax.random.PRNGKey(0)
    key, kx = jax.random.split(key)

    params = init_params(key)
    prepared = prepare_params(params)   # one-time weight prep (hoisted out of forward)

    # Online-RL style small batch (multiple of 8).
    B = 8
    x = jax.random.normal(kx, (B, IN_DIM), jnp.float32)  # (8, 18)
    out = jax.block_until_ready(dqn_forward(x, prepared))
    ref = dqn_reference(x, params)
    assert out.shape == (B, OUT_DIM)
    # bf16 matmul path vs f32 reference -> relaxed tolerance
    assert jnp.allclose(out, ref, atol=3e-2, rtol=3e-2), "mismatch vs JAX reference (B=8)"

    # Ragged batch (not a multiple of 8): exercises the masked last block; verifies
    # OOB rows are discarded and do not contaminate valid rows.
    B2 = 12
    key, kx2 = jax.random.split(key)
    x2 = jax.random.normal(kx2, (B2, IN_DIM), jnp.float32)
    out2 = jax.block_until_ready(dqn_forward(x2, prepared))
    ref2 = dqn_reference(x2, params)
    assert out2.shape == (B2, OUT_DIM)
    assert jnp.allclose(out2, ref2, atol=3e-2, rtol=3e-2), "mismatch vs JAX reference (B=12)"

    print("KERNEL_OK")
</pallas_src>

<mosaic_0001>
module attributes {stable_mosaic.version = 11 : i64} {
  func.func @dqn_kernel(%arg0: i32, %arg1: memref<8x18xf32, #tpu.memory_space<vmem>>, %arg2: memref<18x128xbf16, #tpu.memory_space<vmem>>, %arg3: memref<1x128xf32, #tpu.memory_space<vmem>>, %arg4: memref<128x128xbf16, #tpu.memory_space<vmem>>, %arg5: memref<1x128xf32, #tpu.memory_space<vmem>>, %arg6: memref<128x128xbf16, #tpu.memory_space<vmem>>, %arg7: memref<1x128xf32, #tpu.memory_space<vmem>>, %arg8: memref<128x9xbf16, #tpu.memory_space<vmem>>, %arg9: memref<1x9xf32, #tpu.memory_space<vmem>>, %arg10: memref<8x9xf32, #tpu.memory_space<vmem>>) attributes {dimension_semantics = [#tpu.dimension_semantics<parallel>], iteration_bounds = array<i64: 1>, scalar_prefetch = 0 : i64, scratch_operands = 0 : i64, tpu.core_type = #tpu.core_type<tc>, window_params = [{transform_indices = @transform_0, window_bounds = array<i64: 8, 18>}, {pipeline_mode = #tpu.pipeline_mode<synchronous>, transform_indices = @transform_1, window_bounds = array<i64: 18, 128>}, {pipeline_mode = #tpu.pipeline_mode<synchronous>, transform_indices = @transform_2, window_bounds = array<i64: 1, 128>}, {pipeline_mode = #tpu.pipeline_mode<synchronous>, transform_indices = @transform_3, window_bounds = array<i64: 128, 128>}, {pipeline_mode = #tpu.pipeline_mode<synchronous>, transform_indices = @transform_4, window_bounds = array<i64: 1, 128>}, {pipeline_mode = #tpu.pipeline_mode<synchronous>, transform_indices = @transform_5, window_bounds = array<i64: 128, 128>}, {pipeline_mode = #tpu.pipeline_mode<synchronous>, transform_indices = @transform_6, window_bounds = array<i64: 1, 128>}, {pipeline_mode = #tpu.pipeline_mode<synchronous>, transform_indices = @transform_7, window_bounds = array<i64: 128, 9>}, {pipeline_mode = #tpu.pipeline_mode<synchronous>, transform_indices = @transform_8, window_bounds = array<i64: 1, 9>}, {transform_indices = @transform_9, window_bounds = array<i64: 8, 9>}]} {
    %c0 = arith.constant 0 : index
    %c0_0 = arith.constant 0 : index
    %0 = vector.load %arg1[%c0, %c0_0] : memref<8x18xf32, #tpu.memory_space<vmem>>, vector<8x18xf32>
    %1 = arith.truncf %0 : vector<8x18xf32> to vector<8x18xbf16>
    %c0_1 = arith.constant 0 : index
    %c0_2 = arith.constant 0 : index
    %2 = vector.load %arg2[%c0_1, %c0_2] : memref<18x128xbf16, #tpu.memory_space<vmem>>, vector<18x128xbf16>
    %cst = arith.constant dense<0.000000e+00> : vector<8x128xf32>
    %3 = tpu.matmul %1, %2, %cst {dimension_numbers = #tpu.dot_dimension_numbers<[1], [0], [0], [1], [0, 0, 1, 1], [], []>} : vector<8x18xbf16>, vector<18x128xbf16>, vector<8x128xf32> -> vector<8x128xf32>
    %c0_3 = arith.constant 0 : index
    %c0_4 = arith.constant 0 : index
    %4 = vector.load %arg3[%c0_3, %c0_4] : memref<1x128xf32, #tpu.memory_space<vmem>>, vector<1x128xf32>
    %5 = vector.broadcast %4 : vector<1x128xf32> to vector<8x128xf32>
    %6 = arith.addf %3, %5 : vector<8x128xf32>
    %cst_5 = arith.constant 0.000000e+00 : f32
    %7 = vector.broadcast %cst_5 : f32 to vector<8x128xf32>
    %8 = arith.maximumf %6, %7 : vector<8x128xf32>
    %9 = arith.truncf %8 : vector<8x128xf32> to vector<8x128xbf16>
    %c0_6 = arith.constant 0 : index
    %c0_7 = arith.constant 0 : index
    %10 = vector.load %arg4[%c0_6, %c0_7] : memref<128x128xbf16, #tpu.memory_space<vmem>>, vector<128x128xbf16>
    %cst_8 = arith.constant dense<0.000000e+00> : vector<8x128xf32>
    %11 = tpu.matmul %9, %10, %cst_8 {dimension_numbers = #tpu.dot_dimension_numbers<[1], [0], [0], [1], [0, 0, 1, 1], [], []>} : vector<8x128xbf16>, vector<128x128xbf16>, vector<8x128xf32> -> vector<8x128xf32>
    %c0_9 = arith.constant 0 : index
    %c0_10 = arith.constant 0 : index
    %12 = vector.load %arg5[%c0_9, %c0_10] : memref<1x128xf32, #tpu.memory_space<vmem>>, vector<1x128xf32>
    %13 = vector.broadcast %12 : vector<1x128xf32> to vector<8x128xf32>
    %14 = arith.addf %11, %13 : vector<8x128xf32>
    %cst_11 = arith.constant 0.000000e+00 : f32
    %15 = vector.broadcast %cst_11 : f32 to vector<8x128xf32>
    %16 = arith.maximumf %14, %15 : vector<8x128xf32>
    %17 = arith.truncf %16 : vector<8x128xf32> to vector<8x128xbf16>
    %c0_12 = arith.constant 0 : index
    %c0_13 = arith.constant 0 : index
    %18 = vector.load %arg6[%c0_12, %c0_13] : memref<128x128xbf16, #tpu.memory_space<vmem>>, vector<128x128xbf16>
    %cst_14 = arith.constant dense<0.000000e+00> : vector<8x128xf32>
    %19 = tpu.matmul %17, %18, %cst_14 {dimension_numbers = #tpu.dot_dimension_numbers<[1], [0], [0], [1], [0, 0, 1, 1], [], []>} : vector<8x128xbf16>, vector<128x128xbf16>, vector<8x128xf32> -> vector<8x128xf32>
    %c0_15 = arith.constant 0 : index
    %c0_16 = arith.constant 0 : index
    %20 = vector.load %arg7[%c0_15, %c0_16] : memref<1x128xf32, #tpu.memory_space<vmem>>, vector<1x128xf32>
    %21 = vector.broadcast %20 : vector<1x128xf32> to vector<8x128xf32>
    %22 = arith.addf %19, %21 : vector<8x128xf32>
    %cst_17 = arith.constant 0.000000e+00 : f32
    %23 = vector.broadcast %cst_17 : f32 to vector<8x128xf32>
    %24 = arith.maximumf %22, %23 : vector<8x128xf32>
    %25 = arith.truncf %24 : vector<8x128xf32> to vector<8x128xbf16>
    %c0_18 = arith.constant 0 : index
    %c0_19 = arith.constant 0 : index
    %26 = vector.load %arg8[%c0_18, %c0_19] : memref<128x9xbf16, #tpu.memory_space<vmem>>, vector<128x9xbf16>
    %cst_20 = arith.constant dense<0.000000e+00> : vector<8x9xf32>
    %27 = tpu.matmul %25, %26, %cst_20 {dimension_numbers = #tpu.dot_dimension_numbers<[1], [0], [0], [1], [0, 0, 1, 1], [], []>} : vector<8x128xbf16>, vector<128x9xbf16>, vector<8x9xf32> -> vector<8x9xf32>
    %c0_21 = arith.constant 0 : index
    %c0_22 = arith.constant 0 : index
    %28 = vector.load %arg9[%c0_21, %c0_22] : memref<1x9xf32, #tpu.memory_space<vmem>>, vector<1x9xf32>
    %29 = vector.broadcast %28 : vector<1x9xf32> to vector<8x9xf32>
    %30 = arith.addf %27, %29 : vector<8x9xf32>
    %c0_23 = arith.constant 0 : index
    %c0_24 = arith.constant 0 : index
    %31 = vector.load %arg10[%c0_23, %c0_24] : memref<8x9xf32, #tpu.memory_space<vmem>>, vector<8x9xf32>
    tpu.vector_store %arg10[%c0_23, %c0_24], %30 {strides = array<i32>} : memref<8x9xf32, #tpu.memory_space<vmem>>, vector<8x9xf32>,
    return
  }
  func.func @transform_0(%arg0: i32) -> (i32, i32) {
    %c0_i32 = arith.constant 0 : i32
    %c0_i32_0 = arith.constant 0 : i32
    return %arg0, %c0_i32 : i32, i32
  }
  func.func @transform_1(%arg0: i32) -> (i32, i32) {
    %c0_i32 = arith.constant 0 : i32
    %c0_i32_0 = arith.constant 0 : i32
    %c0_i32_1 = arith.constant 0 : i32
    return %c0_i32, %c0_i32_0 : i32, i32
  }
  func.func @transform_2(%arg0: i32) -> (i32, i32) {
    %c0_i32 = arith.constant 0 : i32
    %c0_i32_0 = arith.constant 0 : i32
    %c0_i32_1 = arith.constant 0 : i32
    return %c0_i32, %c0_i32_0 : i32, i32
  }
  func.func @transform_3(%arg0: i32) -> (i32, i32) {
    %c0_i32 = arith.constant 0 : i32
    %c0_i32_0 = arith.constant 0 : i32
    %c0_i32_1 = arith.constant 0 : i32
    return %c0_i32, %c0_i32_0 : i32, i32
  }
  func.func @transform_4(%arg0: i32) -> (i32, i32) {
    %c0_i32 = arith.constant 0 : i32
    %c0_i32_0 = arith.constant 0 : i32
    %c0_i32_1 = arith.constant 0 : i32
    return %c0_i32, %c0_i32_0 : i32, i32
  }
  func.func @transform_5(%arg0: i32) -> (i32, i32) {
    %c0_i32 = arith.constant 0 : i32
    %c0_i32_0 = arith.constant 0 : i32
    %c0_i32_1 = arith.constant 0 : i32
    return %c0_i32, %c0_i32_0 : i32, i32
  }
  func.func @transform_6(%arg0: i32) -> (i32, i32) {
    %c0_i32 = arith.constant 0 : i32
    %c0_i32_0 = arith.constant 0 : i32
    %c0_i32_1 = arith.constant 0 : i32
    return %c0_i32, %c0_i32_0 : i32, i32
  }
  func.func @transform_7(%arg0: i32) -> (i32, i32) {
    %c0_i32 = arith.constant 0 : i32
    %c0_i32_0 = arith.constant 0 : i32
    %c0_i32_1 = arith.constant 0 : i32
    return %c0_i32, %c0_i32_0 : i32, i32
  }
  func.func @transform_8(%arg0: i32) -> (i32, i32) {
    %c0_i32 = arith.constant 0 : i32
    %c0_i32_0 = arith.constant 0 : i32
    %c0_i32_1 = arith.constant 0 : i32
    return %c0_i32, %c0_i32_0 : i32, i32
  }
  func.func @transform_9(%arg0: i32) -> (i32, i32) {
    %c0_i32 = arith.constant 0 : i32
    %c0_i32_0 = arith.constant 0 : i32
    return %arg0, %c0_i32 : i32, i32
  }
}

</mosaic_0001>

<bundles_post_ra>
// kernel: tpu_custom_call.1
= control target key start
LH: loop header
LB: loop body
LE: loop exit
PB: predicated region body
PF: predicated region fallthrough
CT: control target
= control target key end

     0   :  { %14 = vsyncpa [#allocation3], 0  ;;  %s920_s0 = inlined_call_operand.hbm [shape: f32[8,18], index: 0, kind: input, shape index: {}]   ;;  %s921_s1 = inlined_call_operand.vmem [shape: bf16[18,128], index: 1, kind: input, shape index: {}]   ;;  %s922_s2 = inlined_call_operand.vmem [shape: f32[1,128], index: 2, kind: input, shape index: {}]   ;;  %s923_s3 = inlined_call_operand.vmem [shape: bf16[128,128], index: 3, kind: input, shape index: {}]   ;;  %s924_s4 = inlined_call_operand.vmem [shape: f32[1,128], index: 4, kind: input, shape index: {}]   ;;  %s925_s5 = inlined_call_operand.hbm [shape: bf16[128,128], index: 5, kind: input, shape index: {}]   ;;  %s926_s6 = inlined_call_operand.vmem [shape: f32[1,128], index: 6, kind: input, shape index: {}]   ;;  %s927_s7 = inlined_call_operand.vmem [shape: bf16[128,9], index: 7, kind: input, shape index: {}]   ;;  %s928_s8 = inlined_call_operand.vmem [shape: f32[1,9], index: 8, kind: input, shape index: {}]   ;;  %s929_s9 = inlined_call_operand.hbm [shape: f32[8,9], index: 9, kind: output, shape index: {}]  }
   0x1   :  { %15 = vsyncpa [#allocation6], 0 }
   0x2   :  { %16 = vsyncpa [#allocation4], 0  ;;  %s720_s30 = smov [#allocation2]   ;;  %s721_s11 = smov [#allocation5]  }
   0x3   :  { %s23_s10 = sshll.u32 %s720_s30, 4  ;;  %s40_s12 = sshll.u32 %s721_s11, 4  ;;  %s24_s10 = int_to_ptr.vmem [resolvable:$true] %s23_s10  ;;  %s777_s12 = int_to_ptr.vmem [resolvable:$true] %s40_s12 }
   0x4   :  { %s648_s15 = scalar_lea.hbm %s920_s0, 128 }
   0x5   :  { %p649_p0 = scmp.ne.s32.totalorder %s920_s0, %s648_s15  ;;  %p652_p1 = scmp.lt.u32.totalorder %s648_s15, %s920_s0 }
   0x7   :  { %p654_p2 = pnand %p652_p1, %p649_p0 }
   0x9   :  { %657 = shalt.err (!%p654_p2)
}
   0xa   :  { %s658_s20 = scalar_lea.vmem %s24_s10, 128  ;;  %p663_p4 = scmp.lt.s32.totalorder %s24_s10, %s24_s10 }
   0xb   :  { %p659_p3 = scmp.ne.s32.totalorder %s24_s10, %s658_s20  ;;  %p664_p5 = scmp.lt.s32.totalorder %s658_s20, %s658_s20 }
   0xd   :  { %p665_p6 = por %p664_p5, %p663_p4 }
   0xf   :  { %p666_p7 = pnand %p665_p6, %p659_p3 }
  0x11   :  { %669 = shalt.err (!%p666_p7)
}
  0x12   :  { %26 = dma.hbm_to_vmem [thread:$0]  %s920_s0, 128, %s24_s10, [#allocation3]  }
  0x13   :  { %s670_s25 = scalar_lea.hbm %s925_s5, 1024 }
  0x14   :  { %p671_p8 = scmp.ne.s32.totalorder %s925_s5, %s670_s25  ;;  %p674_p9 = scmp.lt.u32.totalorder %s670_s25, %s925_s5 }
  0x16   :  { %p676_p10 = pnand %p674_p9, %p671_p8 }
  0x18   :  { %679 = shalt.err (!%p676_p10)
}
  0x19   :  { %s680_s30 = scalar_lea.vmem %s777_s12, 1024  ;;  %p685_p12 = scmp.lt.s32.totalorder %s777_s12, %s777_s12 }
  0x1a   :  { %p681_p11 = scmp.ne.s32.totalorder %s777_s12, %s680_s30  ;;  %p686_p13 = scmp.lt.s32.totalorder %s680_s30, %s680_s30 }
  0x1c   :  { %p687_p0 = por %p686_p13, %p685_p12 }
  0x1e   :  { %p688_p1 = pnand %p687_p0, %p681_p11 }
  0x20   :  { %691 = shalt.err (!%p688_p1)
}
  0x21   :  { %s722_s0 = smov 64   ;;  %s723_s10 = smov 4  }
  0x22   :  { %46 = dma.hbm_to_vmem [thread:$0]  %s925_s5, 1024, %s777_s12, [#allocation6], %s722_s0, %s722_s0, %s723_s10  }
  0x23   :  { %714 = dma.done.wait [#allocation3], 128  }
  0x24   :  { %715 = vsyncadd [#allocation3], 4294967168 }
  0x25   :  { %716 = dma.done.wait [#allocation6], 1024  }
  0x26   :  { %717 = vsyncadd [#allocation6], 4294966272  ;;  %v724_v0 = vmov 0.0   ;;  %vm725_vm0 = vmmov 0   ;;  %v622_v1 = vld [vmem:[%s921_s1] sm:$0xff]   ;;  %vm85_vm1 = vcmask 1040384  }
  0x27   :  { %547 = vmatprep.subr.bf16.mxu0 %v724_v0  ;;  %551 = vmatprep.mubr.msk.bf16.mxu0 %vm725_vm0, %v724_v0  ;;  %v623_v2 = vld [vmem:[%s921_s1 + $0x8] ss:$0 sps:$4 sm:$0x11]   ;;  %v60_v3 = vld [vmem:[#allocation2] sm:$0xff]  ;;  %vm81_vm2 = vcmask 146432   ;;  %v626_v8 = vld [vmem:[%s923_s3 + $0x10] sm:$0xff]  }
  0x28   :  { %555 = vmatprep.subr.bf16.mxu1 %v724_v0  ;;  %571 = vmatprep.mubr.msk.bf16.mxu1 %vm725_vm0, %v724_v0  ;;  %v624_v4 = vld [vmem:[%s923_s3] sm:$0xff]   ;;  %v87_v5 = vsel %vm85_vm1, %v623_v2, 0  ;;  %v625_v6 = vld [vmem:[%s923_s3 + $0x8] sm:$0xff]   ;;  %v61_v7 = vpack.c.bf16 %v60_v3, %v60_v3  ;;  %v627_v9 = vld [vmem:[%s923_s3 + $0x18] sm:$0xff]   ;;  %s726_s28 = smov [#allocation7]   ;;  %vm468_vm3 = vcmask 72704  }
  0x29   :  { %548 = vmatpush3.bf16.msra.mxu0 %v622_v1  ;;  %556 = vmatpush3.bf16.msra.mxu1 %v624_v4  ;;  %v628_v10 = vld [vmem:[%s923_s3 + $0x20] sm:$0xff]   ;;  %v629_v11 = vld [vmem:[%s923_s3 + $0x28] sm:$0xff]   ;;  %v630_v12 = vld [vmem:[%s923_s3 + $0x30] sm:$0xff]   ;;  %s476_s29 = sshll.u32 %s726_s28, 4  ;;  %s477_s29 = int_to_ptr.vmem [resolvable:$true] %s476_s29 }
  0x2a   :  { %549 = vmatprep.subr.bf16.mxu0 %v724_v0  ;;  %557 = vmatprep.subr.bf16.mxu1 %v724_v0  ;;  %v631_v13 = vld [vmem:[%s923_s3 + $0x38] sm:$0xff]   ;;  %v632_v14 = vld [vmem:[#allocation5] sm:$0xff]   ;;  %v633_v15 = vld [vmem:[#allocation5 + $0x8] sm:$0xff]   ;;  %p697_p3 = scmp.lt.s32.totalorder %s477_s29, %s477_s29 }
  0x2b   :  { %v634_v16 = vld [vmem:[#allocation5 + $0x10] sm:$0xff]   ;;  %v635_v17 = vld [vmem:[#allocation5 + $0x18] sm:$0xff]   ;;  %v636_v18 = vld [vmem:[#allocation5 + $0x20] sm:$0xff]  }
  0x2c   :  { %v637_v19 = vld [vmem:[#allocation5 + $0x28] sm:$0xff]   ;;  %v486_v20 = vld [vmem:[%s922_s2] ss:$0 sm:$0xff]  ;;  %v638_v28 = vld [vmem:[#allocation5 + $0x30] sm:$0xff]  }
  0x2d   :  { %550 = vmatpush3.bf16.msra.mxu0 %v87_v5  ;;  %558 = vmatpush3.bf16.msra.mxu1 %v625_v6  ;;  %v639_v29 = vld [vmem:[#allocation5 + $0x38] sm:$0xff]   ;;  %v641_v31 = vld [vmem:[%s927_s7 + $0x8] sm:$0xff]   ;;  %v642_v32 = vld [vmem:[%s927_s7 + $0x10] sm:$0xff]  }
  0x2e   :  { %575 = vmatprep.subr.bf16.mxu0 %v724_v0  ;;  %559 = vmatprep.subr.bf16.mxu1 %v724_v0  ;;  %v640_v30 = vld [vmem:[%s927_s7] sm:$0xff]   ;;  %v643_v33 = vld [vmem:[%s927_s7 + $0x18] sm:$0xff]   ;;  %v645_v35 = vld [vmem:[%s927_s7 + $0x28] sm:$0xff]  }
  0x2f   :  { %v644_v34 = vld [vmem:[%s927_s7 + $0x20] sm:$0xff]   ;;  %v646_v44 = vld [vmem:[%s927_s7 + $0x30] sm:$0xff]   ;;  %v647_v45 = vld [vmem:[%s927_s7 + $0x38] sm:$0xff]  }
  0x30   :  { %552 = vmatmul.mubr.msk.bf16.vlgmr.msra.gmra.mrb[0].mxu0 %vm81_vm2, %v61_v7  ;;  %v490_v36 = vld [vmem:[%s924_s4] ss:$0 sm:$0xff] }
  0x31   :  { %591 = vmatprep.mubr.msk.bf16.mxu0 %vm725_vm0, %v724_v0  ;;  %560 = vmatpush3.bf16.msra.mxu1 %v626_v8  ;;  %v499_v46 = vld [vmem:[%s926_s6] ss:$0 sm:$0xff]  ;;  %s692_s6 = scalar_lea.vmem %s477_s29, 128 }
  0x32   :  { %561 = vmatprep.subr.bf16.mxu1 %v724_v0  ;;  %576 = vmatpush3.bf16.msra.mxu0 %v632_v14  ;;  %v508_v54 = vld [vmem:[%s928_s8] ss:$0 sm:$0xff]  ;;  %p693_p2 = scmp.ne.s32.totalorder %s477_s29, %s692_s6  ;;  %p698_p4 = scmp.lt.s32.totalorder %s692_s6, %s692_s6 }
  0x33   :  { %577 = vmatprep.subr.bf16.mxu0 %v724_v0 }
  0x34   :  { %p699_p5 = por %p698_p4, %p697_p3 }
  0x35   :  { %562 = vmatpush3.bf16.msra.mxu1 %v627_v9 }
  0x36   :  { %563 = vmatprep.subr.bf16.mxu1 %v724_v0  ;;  %578 = vmatpush3.bf16.msra.mxu0 %v633_v15  ;;  %p700_p6 = pnand %p699_p5, %p693_p2 }
  0x37   :  { %579 = vmatprep.subr.bf16.mxu0 %v724_v0 }
  0x39   :  { %564 = vmatpush3.bf16.msra.mxu1 %v628_v10 }
  0x3a   :  { %565 = vmatprep.subr.bf16.mxu1 %v724_v0  ;;  %580 = vmatpush3.bf16.msra.mxu0 %v634_v16 }
  0x3b   :  { %581 = vmatprep.subr.bf16.mxu0 %v724_v0 }
  0x3d   :  { %566 = vmatpush3.bf16.msra.mxu1 %v629_v11 }
  0x3e   :  { %567 = vmatprep.subr.bf16.mxu1 %v724_v0  ;;  %582 = vmatpush3.bf16.msra.mxu0 %v635_v17 }
  0x3f   :  { %583 = vmatprep.subr.bf16.mxu0 %v724_v0 }
  0x41   :  { %568 = vmatpush3.bf16.msra.mxu1 %v630_v12 }
  0x42   :  { %569 = vmatprep.subr.bf16.mxu1 %v724_v0  ;;  %584 = vmatpush3.bf16.msra.mxu0 %v636_v18 }
  0x43   :  { %585 = vmatprep.subr.bf16.mxu0 %v724_v0 }
  0x45   :  { %570 = vmatpush3.bf16.msra.mxu1 %v631_v13 }
  0x46   :  { %595 = vmatprep.subr.bf16.mxu1 %v724_v0  ;;  %586 = vmatpush3.bf16.msra.mxu0 %v637_v19 }
  0x47   :  { %587 = vmatprep.subr.bf16.mxu0 %v724_v0 }
  0x4a   :  { %588 = vmatpush3.bf16.msra.mxu0 %v638_v28 }
  0x4b   :  { %589 = vmatprep.subr.bf16.mxu0 %v724_v0 }
  0x4e   :  { %590 = vmatpush3.bf16.msra.mxu0 %v639_v29 }
 0x103   :  { %v123_v21 = vpop.f32.mrb[0].mxu0 }
 0x104   :  { %v124_v22 = vadd.f32 %v486_v20, %v123_v21  ;;  %v553_v23 = vpop.f32.mrb[1].mxu0 }
 0x105   :  { %v126_v24 = vpop.f32.mrb[2].mxu0 }
 0x106   :  { %v129_v25 = vmax.f32 %v124_v22, 0.0  ;;  %v554_v26 = vpop.f32.mrb[3].mxu0 }
 0x108   :  { %v130_v27 = vpack.c.bf16 %v129_v25, %v129_v25 }
 0x10a   :  { %572 = vmatmul.mubr.bf16.vlgmr.msra.gmra.mrb[0].mxu1 %v130_v27 }
 0x10b   :  { %611 = vmatprep.mubr.msk.bf16.mxu1 %vm725_vm0, %v724_v0  ;;  %596 = vmatpush3.bf16.msra.mxu1 %v640_v30 }
 0x10c   :  { %597 = vmatprep.subr.bf16.mxu1 %v724_v0 }
 0x10f   :  { %598 = vmatpush3.bf16.msra.mxu1 %v641_v31 }
 0x110   :  { %599 = vmatprep.subr.bf16.mxu1 %v724_v0 }
 0x113   :  { %600 = vmatpush3.bf16.msra.mxu1 %v642_v32 }
 0x114   :  { %601 = vmatprep.subr.bf16.mxu1 %v724_v0 }
 0x117   :  { %602 = vmatpush3.bf16.msra.mxu1 %v643_v33 }
 0x118   :  { %603 = vmatprep.subr.bf16.mxu1 %v724_v0 }
 0x11b   :  { %604 = vmatpush3.bf16.msra.mxu1 %v644_v34 }
 0x11c   :  { %605 = vmatprep.subr.bf16.mxu1 %v724_v0 }
 0x11f   :  { %606 = vmatpush3.bf16.msra.mxu1 %v645_v35 }
 0x120   :  { %607 = vmatprep.subr.bf16.mxu1 %v724_v0 }
 0x123   :  { %608 = vmatpush3.bf16.msra.mxu1 %v646_v44 }
 0x124   :  { %609 = vmatprep.subr.bf16.mxu1 %v724_v0 }
 0x127   :  { %610 = vmatpush3.bf16.msra.mxu1 %v647_v45 }
 0x1dd   :  { %v236_v37 = vpop.f32.mrb[0].mxu1 }
 0x1de   :  { %v237_v38 = vadd.f32 %v490_v36, %v236_v37  ;;  %v573_v39 = vpop.f32.mrb[1].mxu1 }
 0x1df   :  { %v239_v40 = vpop.f32.mrb[2].mxu1 }
 0x1e0   :  { %v242_v41 = vmax.f32 %v237_v38, 0.0  ;;  %v574_v42 = vpop.f32.mrb[3].mxu1 }
 0x1e2   :  { %v243_v43 = vpack.c.bf16 %v242_v41, %v242_v41 }
 0x1e4   :  { %592 = vmatmul.mubr.bf16.vlgmr.msra.gmra.mrb[4].mxu0 %v243_v43 }
 0x2b7   :  { %v349_v47 = vpop.f32.mrb[4].mxu0 }
 0x2b8   :  { %v350_v48 = vadd.f32 %v499_v46, %v349_v47  ;;  %v593_v49 = vpop.f32.mrb[5].mxu0 }
 0x2b9   :  { %v352_v50 = vpop.f32.mrb[6].mxu0 }
 0x2ba   :  { %v355_v51 = vmax.f32 %v350_v48, 0.0  ;;  %v594_v52 = vpop.f32.mrb[7].mxu0 }
 0x2bc   :  { %v356_v53 = vpack.c.bf16 %v355_v51, %v355_v51 }
 0x2be   :  { %612 = vmatmul.mubr.bf16.vlgmr.msra.gmra.mrb[4].mxu1 %v356_v53 }
 0x391   :  { %v462_v55 = vpop.f32.mrb[4].mxu1 }
 0x392   :  { %v463_v56 = vadd.f32 %v508_v54, %v462_v55  ;;  %v613_v57 = vpop.f32.mrb[5].mxu1 }
 0x393   :  { %v465_v58 = vpop.f32.mrb[6].mxu1 }
 0x394   :  { %v614_v59 = vpop.f32.mrb[7].mxu1  ;;  %469 = vst.msk [vmem:[#allocation7] sm:$0xff] %vm468_vm3, %v463_v56 }
 0x395   :  { %703 = shalt.err (!%p700_p6)
}
 0x396   :  { %s704_s8 = scalar_lea.hbm %s929_s9, 128 }
 0x397   :  { %p705_p7 = scmp.ne.s32.totalorder %s929_s9, %s704_s8  ;;  %p708_p8 = scmp.lt.u32.totalorder %s704_s8, %s929_s9 }
 0x399   :  { %p710_p9 = pnand %p708_p8, %p705_p7 }
 0x39b   :  { %713 = shalt.err (!%p710_p9)
}
 0x39c   :  { %479 = dma.vmem_to_hbm [thread:$0]  %s477_s29, 128, %s929_s9, [#allocation4]  }
 0x39d   :  { %718 = dma.done.wait [#allocation4], 128  }
 0x39e   :  { %719 = vsyncadd [#allocation4], 4294967168 }
 0x39f   :  { %483 = vsyncpa [#allocation3], 1 }
 0x3a0   :  { %484 = vsyncpa [#allocation6], 1 }
 0x3a1   :  { %485 = vsyncpa [#allocation4], 1 }

</bundles_post_ra>
